<compile_context>
chip_gen: v7x
topology: tpu7x:2x2x1
jax: 0.10.0
libtpu: 0.0.40
codegen_flags: <defaults>
</compile_context>

<pallas_src>
import jax
import jax.numpy as jnp
from jax.experimental import pallas as pl
from jax.experimental.pallas import tpu as pltpu

INPUT_DIM = 4
OUTPUT_DIM = 2

PACK = 64        # batch rows packed per lane row: PACK*INPUT_DIM = 256, PACK*OUTPUT_DIM = 128
SUBLANE = 8      # sublane granularity for the packed-row tile
MAX_TB = 2048    # packed rows per grid step (= 131072 samples); ~6 MiB double-buffered VMEM


def _round_up(n, m):
    return ((n + m - 1) // m) * m


def prepare_linear_params(weight, bias, dtype=jnp.float32):
    """One-time layout of nn.Linear params for the batch-packed kernel.

    weight: (OUT, IN), bias: (OUT,)  ->
      w_big: (PACK*IN, PACK*OUT) block-diagonal with w_big[IN*s + f, OUT*s + o] = weight[o, f]
      b_big: (1, PACK*OUT), bias tiled PACK times.
    Hoisted out of the forward so it runs once at parameter-init, not per call.
    """
    out_dim, in_dim = weight.shape
    weight = weight.astype(dtype)
    bias = bias.astype(dtype)
    eye = jnp.eye(PACK, dtype=dtype)
    # (s, f, t, o) = eye[s, t] * weight[o, f]  ->  block-diagonal after row-major reshape.
    w_big = jnp.einsum("st,of->sfto", eye, weight).reshape(PACK * in_dim, PACK * out_dim)
    b_big = jnp.tile(bias, PACK).reshape(1, PACK * out_dim)
    return w_big, b_big


def _linear_packed_kernel(x_ref, w_ref, b_ref, y_ref):
    # x_ref: (tb, PACK*IN), w_ref: (PACK*IN, PACK*OUT), b_ref: (1, PACK*OUT),
    # y_ref: (tb, PACK*OUT).  Single MXU matmul with K = PACK*IN = 256, f32 accumulation.
    acc = jnp.dot(x_ref[...], w_ref[...], preferred_element_type=jnp.float32)
    y_ref[...] = (acc + b_ref[...]).astype(y_ref.dtype)


@jax.jit
def linear_forward(x, w_big, b_big):
    """x: (B, INPUT_DIM) f32; w_big/b_big from prepare_linear_params.  Returns (B, OUTPUT_DIM)."""
    B, in_dim = x.shape
    out_dim = w_big.shape[1] // PACK

    # Pack the batch into lanes: (B, IN) -> (B/PACK, PACK*IN).  Row-major reshape = free.
    # Ragged batches are padded only up to a multiple of PACK (<= 63 extra rows).
    b_pad = _round_up(max(B, PACK), PACK)
    if b_pad != B:
        x = jnp.pad(x, ((0, b_pad - B), (0, 0)))
    rows = b_pad // PACK
    x_packed = x.reshape(rows, PACK * in_dim)

    # Packed-row tile: multiple of 8 sublanes, capped at MAX_TB, and sized so the grid
    # has >= 2 steps when possible (lets the "parallel" axis shard across v7x's 2 TCs).
    if rows <= SUBLANE:
        tb = rows                               # single block == full array extent
    else:
        tb = min(MAX_TB, _round_up(pl.cdiv(rows, 2), SUBLANE))
    grid = (pl.cdiv(rows, tb),)

    itemsize = jnp.dtype(jnp.float32).itemsize
    bytes_accessed = (x_packed.size + w_big.size + b_big.size
                      + rows * PACK * out_dim) * itemsize

    y_packed = pl.pallas_call(
        _linear_packed_kernel,
        out_shape=jax.ShapeDtypeStruct((rows, PACK * out_dim), jnp.float32),
        grid_spec=pl.GridSpec(
            grid=grid,
            in_specs=[
                # x streams over packed rows (double-buffered by the pipeline).
                pl.BlockSpec((tb, PACK * in_dim), lambda i: (i, 0)),
                # weight / bias stay resident across all grid steps.
                pl.BlockSpec((PACK * in_dim, PACK * out_dim), lambda i: (0, 0)),
                pl.BlockSpec((1, PACK * out_dim), lambda i: (0, 0)),
            ],
            out_specs=pl.BlockSpec((tb, PACK * out_dim), lambda i: (i, 0)),
        ),
        compiler_params=pltpu.CompilerParams(
            # Batch (packed-row) axis is independent -> split across both TCs on v7x.
            dimension_semantics=("parallel",),
        ),
        cost_estimate=pl.CostEstimate(
            flops=2 * B * in_dim * out_dim,     # logical flops (block-diag zeros excluded)
            transcendentals=0,
            bytes_accessed=bytes_accessed,
        ),
    )(x_packed, w_big, b_big)

    # Unpack: (rows, PACK*OUT) -> (b_pad, OUT) is a free row-major reshape; slice off the
    # (< PACK) padded rows only when the batch was ragged.
    y = y_packed.reshape(b_pad, out_dim)
    return y if b_pad == B else y[:B]


if __name__ == "__main__":
    key = jax.random.PRNGKey(0)
    k_x, k_w, k_b, k_x2 = jax.random.split(key, 4)

    # Deterministic params mirroring nn.Linear default init: U(-1/sqrt(in), 1/sqrt(in)).
    bound = 1.0 / (INPUT_DIM ** 0.5)
    weight = jax.random.uniform(k_w, (OUTPUT_DIM, INPUT_DIM),
                                minval=-bound, maxval=bound, dtype=jnp.float32)
    bias = jax.random.uniform(k_b, (OUTPUT_DIM,),
                              minval=-bound, maxval=bound, dtype=jnp.float32)

    # One-time parameter layout (hoisted out of the forward pass).
    w_big, b_big = prepare_linear_params(weight, bias)

    # Small shape consistent with the module.
    batch = 8
    x = jax.random.normal(k_x, (batch, INPUT_DIM), dtype=jnp.float32)
    y = jax.block_until_ready(linear_forward(x, w_big, b_big))
    y_ref = x @ weight.T + bias
    assert y.shape == (batch, OUTPUT_DIM)
    assert jnp.allclose(y, y_ref, atol=1e-5, rtol=1e-5)

    # Secondary check: ragged batch exercising the packed, multi-step tiled path.
    batch2 = 1000
    x2 = jax.random.normal(k_x2, (batch2, INPUT_DIM), dtype=jnp.float32)
    y2 = jax.block_until_ready(linear_forward(x2, w_big, b_big))
    y2_ref = x2 @ weight.T + bias
    assert y2.shape == (batch2, OUTPUT_DIM)
    assert jnp.allclose(y2, y2_ref, atol=1e-5, rtol=1e-5)

    print("KERNEL_OK")
</pallas_src>

<mosaic_0001>
module attributes {stable_mosaic.version = 11 : i64} {
  func.func @_linear_packed_kernel(%arg0: i32, %arg1: memref<1x256xf32, #tpu.memory_space<vmem>>, %arg2: memref<256x128xf32, #tpu.memory_space<vmem>>, %arg3: memref<1x128xf32, #tpu.memory_space<vmem>>, %arg4: memref<1x128xf32, #tpu.memory_space<vmem>>) attributes {dimension_semantics = [#tpu.dimension_semantics<parallel>], iteration_bounds = array<i64: 1>, scalar_prefetch = 0 : i64, scratch_operands = 0 : i64, tpu.core_type = #tpu.core_type<tc>, window_params = [{transform_indices = @transform_0, window_bounds = array<i64: 1, 256>}, {pipeline_mode = #tpu.pipeline_mode<synchronous>, transform_indices = @transform_1, window_bounds = array<i64: 256, 128>}, {pipeline_mode = #tpu.pipeline_mode<synchronous>, transform_indices = @transform_2, window_bounds = array<i64: 1, 128>}, {transform_indices = @transform_3, window_bounds = array<i64: 1, 128>}]} {
    %c0 = arith.constant 0 : index
    %c0_0 = arith.constant 0 : index
    %0 = vector.load %arg1[%c0, %c0_0] : memref<1x256xf32, #tpu.memory_space<vmem>>, vector<1x256xf32>
    %c0_1 = arith.constant 0 : index
    %c0_2 = arith.constant 0 : index
    %1 = vector.load %arg2[%c0_1, %c0_2] : memref<256x128xf32, #tpu.memory_space<vmem>>, vector<256x128xf32>
    %cst = arith.constant dense<0.000000e+00> : vector<1x128xf32>
    %2 = tpu.matmul %0, %1, %cst {dimension_numbers = #tpu.dot_dimension_numbers<[1], [0], [0], [1], [0, 0, 1, 1], [], []>} : vector<1x256xf32>, vector<256x128xf32>, vector<1x128xf32> -> vector<1x128xf32>
    %c0_3 = arith.constant 0 : index
    %c0_4 = arith.constant 0 : index
    %3 = vector.load %arg3[%c0_3, %c0_4] : memref<1x128xf32, #tpu.memory_space<vmem>>, vector<1x128xf32>
    %4 = arith.addf %2, %3 : vector<1x128xf32>
    %c0_5 = arith.constant 0 : index
    %c0_6 = arith.constant 0 : index
    %5 = vector.load %arg4[%c0_5, %c0_6] : memref<1x128xf32, #tpu.memory_space<vmem>>, vector<1x128xf32>
    tpu.vector_store %arg4[%c0_5, %c0_6], %4 {strides = array<i32>} : memref<1x128xf32, #tpu.memory_space<vmem>>, vector<1x128xf32>,
    return
  }
  func.func @transform_0(%arg0: i32) -> (i32, i32) {
    %c0_i32 = arith.constant 0 : i32
    %c0_i32_0 = arith.constant 0 : i32
    return %arg0, %c0_i32 : i32, i32
  }
  func.func @transform_1(%arg0: i32) -> (i32, i32) {
    %c0_i32 = arith.constant 0 : i32
    %c0_i32_0 = arith.constant 0 : i32
    %c0_i32_1 = arith.constant 0 : i32
    return %c0_i32, %c0_i32_0 : i32, i32
  }
  func.func @transform_2(%arg0: i32) -> (i32, i32) {
    %c0_i32 = arith.constant 0 : i32
    %c0_i32_0 = arith.constant 0 : i32
    %c0_i32_1 = arith.constant 0 : i32
    return %c0_i32, %c0_i32_0 : i32, i32
  }
  func.func @transform_3(%arg0: i32) -> (i32, i32) {
    %c0_i32 = arith.constant 0 : i32
    %c0_i32_0 = arith.constant 0 : i32
    return %arg0, %c0_i32 : i32, i32
  }
}

</mosaic_0001>

<bundles_post_ra>
// kernel: linear_forward.1
= control target key start
LH: loop header
LB: loop body
LE: loop exit
PB: predicated region body
PF: predicated region fallthrough
CT: control target
= control target key end

     0   :  { %8 = vsyncpa [#allocation3], 0  ;;  %s243_s12 = smov [#allocation2]   ;;  %s287_s0 = inlined_call_operand.vmem [shape: f32[1,256], index: 0, kind: input, shape index: {}]   ;;  %s288_s1 = inlined_call_operand.hbm [shape: f32[256,128], index: 1, kind: input, shape index: {}]   ;;  %s289_s2 = inlined_call_operand.vmem [shape: f32[1,128], index: 2, kind: input, shape index: {}]   ;;  %s290_s3 = inlined_call_operand.vmem [shape: f32[1,128], index: 3, kind: output, shape index: {}]  }
   0x1   :  { %s16_s13 = sshll.u32 %s243_s12, 4  ;;  %s219_s16 = scalar_lea.hbm %s288_s1, 4096  ;;  %s17_s13 = int_to_ptr.vmem [resolvable:$true] %s16_s13 }
   0x2   :  { %p220_p0 = scmp.ne.s32.totalorder %s288_s1, %s219_s16  ;;  %p223_p1 = scmp.lt.u32.totalorder %s219_s16, %s288_s1 }
   0x4   :  { %p225_p2 = pnand %p223_p1, %p220_p0 }
   0x6   :  { %228 = shalt.err (!%p225_p2)
}
   0x7   :  { %s229_s21 = scalar_lea.vmem %s17_s13, 4096  ;;  %p234_p4 = scmp.lt.s32.totalorder %s17_s13, %s17_s13 }
   0x8   :  { %p230_p3 = scmp.ne.s32.totalorder %s17_s13, %s229_s21  ;;  %p235_p5 = scmp.lt.s32.totalorder %s229_s21, %s229_s21 }
   0xa   :  { %p236_p6 = por %p235_p5, %p234_p4 }
   0xc   :  { %p237_p7 = pnand %p236_p6, %p230_p3 }
   0xe   :  { %240 = shalt.err (!%p237_p7)
}
   0xf   :  { %s244_s22 = smov 128   ;;  %s245_s23 = smov 8  }
  0x10   :  { %22 = dma.hbm_to_vmem [thread:$0]  %s288_s1, 4096, %s17_s13, [#allocation3], %s244_s22, %s244_s22, %s245_s23  }
  0x11   :  { %241 = dma.done.wait [#allocation3], 4096  }
  0x12   :  { %242 = vsyncadd [#allocation3], 4294963200  ;;  %v63_v0 = vlaneseq  ;;  %v45_v1 = vld [vmem:[#allocation2 + $0x80] sm:$0xff]  ;;  %v46_v2 = vld [vmem:[#allocation2 + $0x88] sm:$0xff] }
  0x13   :  { %v29_v3 = vld [vmem:[#allocation2] sm:$0xff]  ;;  %v184_v4 = vpack.c.bf16 %v46_v2, %v45_v1  ;;  %v30_v5 = vld [vmem:[#allocation2 + $0x8] sm:$0xff]  ;;  %v47_v6 = vld [vmem:[#allocation2 + $0x90] sm:$0xff] }
  0x14   :  { %v48_v7 = vld [vmem:[#allocation2 + $0x98] sm:$0xff]  ;;  %v186_v8 = vpack.c.bf16 %v30_v5, %v29_v3  ;;  %v31_v10 = vld [vmem:[#allocation2 + $0x10] sm:$0xff]  ;;  %v49_v12 = vld [vmem:[#allocation2 + $0xa0] sm:$0xff]  ;;  %v64_v14 = vshrl.u32 %v63_v0, 7 }
  0x15   :  { %v188_v9 = vpack.c.bf16 %v48_v7, %v47_v6  ;;  %v32_v11 = vld [vmem:[#allocation2 + $0x18] sm:$0xff]  ;;  %185 = vmatprep.subr.bf16.mxu0 %v184_v4  ;;  %v50_v13 = vld [vmem:[#allocation2 + $0xa8] sm:$0xff]  ;;  %v33_v17 = vld [vmem:[#allocation2 + $0x20] sm:$0xff] }
  0x16   :  { %187 = vmatpush3.bf16.msra.mxu0 %v186_v8  ;;  %v190_v15 = vpack.c.bf16 %v32_v11, %v31_v10  ;;  %v192_v16 = vpack.c.bf16 %v50_v13, %v49_v12  ;;  %v34_v18 = vld [vmem:[#allocation2 + $0x28] sm:$0xff]  ;;  %v51_v19 = vld [vmem:[#allocation2 + $0xb0] sm:$0xff]  ;;  %v52_v20 = vld [vmem:[#allocation2 + $0xb8] sm:$0xff]  ;;  %v69_v21 = vsub.s32 1, %v64_v14  ;;  %v65_v52 = vsub.s32 0, %v64_v14 }
  0x17   :  { %189 = vmatprep.subr.bf16.mxu0 %v188_v9  ;;  %v194_v22 = vpack.c.bf16 %v34_v18, %v33_v17  ;;  %v196_v23 = vpack.c.bf16 %v52_v20, %v51_v19  ;;  %v35_v24 = vld [vmem:[#allocation2 + $0x30] sm:$0xff]  ;;  %v36_v25 = vld [vmem:[#allocation2 + $0x38] sm:$0xff]  ;;  %v53_v26 = vld [vmem:[#allocation2 + $0xc0] sm:$0xff] }
  0x18   :  { %v54_v27 = vld [vmem:[#allocation2 + $0xc8] sm:$0xff]  ;;  %v28_v28 = vld [vmem:[%s287_s0] sm:$0x3]  ;;  %v198_v30 = vpack.c.bf16 %v36_v25, %v35_v24  ;;  %v55_v34 = vld [vmem:[#allocation2 + $0xd0] sm:$0xff] }
  0x19   :  { %v70_v29 = vrot.slane %v28_v28, %v69_v21  ;;  %v200_v31 = vpack.c.bf16 %v54_v27, %v53_v26  ;;  %v37_v32 = vld [vmem:[#allocation2 + $0x40] sm:$0xff]  ;;  %v38_v33 = vld [vmem:[#allocation2 + $0x48] sm:$0xff]  ;;  %v56_v35 = vld [vmem:[#allocation2 + $0xd8] sm:$0xff]  ;;  %v66_v54 = vrot.slane %v28_v28, %v65_v52 }
  0x1a   :  { %191 = vmatpush3.bf16.msra.mxu0 %v190_v15  ;;  %v202_v36 = vpack.c.bf16 %v38_v33, %v37_v32  ;;  %v204_v37 = vpack.c.bf16 %v56_v35, %v55_v34  ;;  %v39_v38 = vld [vmem:[#allocation2 + $0x50] sm:$0xff]  ;;  %v40_v39 = vld [vmem:[#allocation2 + $0x58] sm:$0xff]  ;;  %v57_v40 = vld [vmem:[#allocation2 + $0xe0] sm:$0xff] }
  0x1b   :  { %193 = vmatprep.subr.bf16.mxu0 %v192_v16  ;;  %137 = vmatprep.mubr.f32.mxu0 %v70_v29  ;;  %v58_v41 = vld [vmem:[#allocation2 + $0xe8] sm:$0xff]  ;;  %v206_v42 = vpack.c.bf16 %v40_v39, %v39_v38  ;;  %v41_v44 = vld [vmem:[#allocation2 + $0x60] sm:$0xff]  ;;  %v59_v46 = vld [vmem:[#allocation2 + $0xf0] sm:$0xff] }
  0x1c   :  { %v208_v43 = vpack.c.bf16 %v58_v41, %v57_v40  ;;  %v42_v45 = vld [vmem:[#allocation2 + $0x68] sm:$0xff]  ;;  %v60_v47 = vld [vmem:[#allocation2 + $0xf8] sm:$0xff]  ;;  %v43_v50 = vld [vmem:[#allocation2 + $0x70] sm:$0xff] }
  0x1d   :  { %v210_v48 = vpack.c.bf16 %v42_v45, %v41_v44  ;;  %v212_v49 = vpack.c.bf16 %v60_v47, %v59_v46  ;;  %v44_v51 = vld [vmem:[#allocation2 + $0x78] sm:$0xff]  ;;  %v61_v56 = vld [vmem:[%s289_s2] sm:$0x1] }
  0x1e   :  { %195 = vmatpush3.bf16.msra.mxu0 %v194_v22  ;;  %v214_v53 = vpack.c.bf16 %v44_v51, %v43_v50 }
  0x1f   :  { %197 = vmatprep.subr.bf16.mxu0 %v196_v23 }
  0x22   :  { %199 = vmatpush3.bf16.msra.mxu0 %v198_v30 }
  0x23   :  { %201 = vmatprep.subr.bf16.mxu0 %v200_v31 }
  0x26   :  { %203 = vmatpush3.bf16.msra.mxu0 %v202_v36 }
  0x27   :  { %205 = vmatprep.subr.bf16.mxu0 %v204_v37 }
  0x2a   :  { %207 = vmatpush3.bf16.msra.mxu0 %v206_v42 }
  0x2b   :  { %209 = vmatprep.subr.bf16.mxu0 %v208_v43 }
  0x2e   :  { %211 = vmatpush3.bf16.msra.mxu0 %v210_v48 }
  0x2f   :  { %213 = vmatprep.subr.bf16.mxu0 %v212_v49 }
  0x32   :  { %215 = vmatpush3.bf16.msra.mxu0 %v214_v53 }
  0x35   :  { %138 = vmatmul.mubr.f32.vlgmr.msra.gmra.mrb[0].mxu0 %v66_v54 }
 0x108   :  { %v181_v55 = vpop.f32.mrb[0].mxu0 }
 0x109   :  { %v182_v57 = vpop.f32.mrb[1].mxu0 }
 0x10a   :  { %v183_v58 = vadd.f32 %v182_v57, %v181_v55 }
 0x10c   :  { %v140_v59 = vadd.f32 %v183_v58, %v61_v56 }
 0x10e   :  { %143 = vst [vmem:[%s290_s3] sm:$0x1] %v140_v59 }
 0x10f   :  { %148 = vsyncpa [#allocation3], 1 }

</bundles_post_ra>
